<compile_context>
chip_gen: v6e
topology: v6e:2x2x1
jax: 0.10.0
libtpu: 0.0.40
codegen_flags: <defaults>
</compile_context>

<pallas_src>
import functools

import jax
import jax.numpy as jnp
from jax import lax
from jax.experimental import pallas as pl
from jax.experimental.pallas import tpu as pltpu


# ------------------------------ fused kernel -------------------------------

def cpc_fused_kernel(x_ref, enc_w_ref, enc_b_ref, h0_ref,
                     wih_t_ref, whh_t_ref, bih_ref, bhh_ref,
                     predw_ref, predb_ref,
                     h_out_ref, stats_ref):
    # Shapes (all static, rows are TIME-MAJOR: row = t*B + b):
    #   x_ref      : (n_w*B, C*W) bf16
    #   enc_w_ref  : (C*W, L) bf16,  enc_b_ref : (1, L) f32
    #   h0_ref     : (B, H) f32
    #   wih_t_ref  : (L, 3H) bf16,  whh_t_ref : (H, 3H) bf16
    #   bih/bhh    : (1, 3H) f32
    #   predw_ref  : (H, K*L) bf16 packed [W_0^T | W_1^T | ...]
    #   predb_ref  : (K*L, 1) f32
    #   h_out_ref  : (B, H) f32 (aliased with h0),  stats_ref : (1, 2) f32
    B, H = h0_ref.shape
    n_rows = x_ref.shape[0]
    n_w = n_rows // B
    L = enc_w_ref.shape[1]
    K = predb_ref.shape[0] // L
    t_in = n_w - K

    # ---- encoder: one matmul for all windows (bf16 operands, f32 acc) ----
    lat = jnp.maximum(
        jnp.dot(x_ref[...], enc_w_ref[...], preferred_element_type=jnp.float32)
        + enc_b_ref[...], 0.0)                                   # (n_w*B, L) f32

    # ---- hoisted GRU input-gate matmul, ONLY for the first t_in windows ----
    lat_ctx = lat[:t_in * B, :].astype(jnp.bfloat16)
    gi_all = (jnp.dot(lat_ctx, wih_t_ref[...],
                      preferred_element_type=jnp.float32)
              + bih_ref[...])                                    # (t_in*B, 3H) f32

    # ---- GRU recurrence (statically unrolled, PyTorch gate order r,z,n) ----
    whh_t = whh_t_ref[...]
    bhh = bhh_ref[...]
    h = h0_ref[...]                                              # f32
    for t in range(t_in):
        gi = gi_all[t * B:(t + 1) * B, :]                        # contiguous (B,3H)
        gh = jnp.dot(h.astype(jnp.bfloat16), whh_t,
                     preferred_element_type=jnp.float32) + bhh
        r = jax.nn.sigmoid(gi[:, 0:H] + gh[:, 0:H])
        z = jax.nn.sigmoid(gi[:, H:2 * H] + gh[:, H:2 * H])
        n = jnp.tanh(gi[:, 2 * H:3 * H] + r * gh[:, 2 * H:3 * H])
        h = (1.0 - z) * n + z * h

    # ---- all K predictions pre-transposed: P[k*L+l, b] = (ctx @ W_k^T + b_k)[b, l]
    p_all = lax.dot_general(predw_ref[...], h.astype(jnp.bfloat16),
                            (((0,), (1,)), ((), ())),
                            preferred_element_type=jnp.float32) + predb_ref[...]

    # ---- InfoNCE scoring (log-softmax over dim=1, argmax over dim=0) ----
    row_idx = lax.broadcasted_iota(jnp.int32, (B, B), 0)
    eye = row_idx == lax.broadcasted_iota(jnp.int32, (B, B), 1)
    col_ids = lax.broadcasted_iota(jnp.int32, (1, B), 1)

    loss_acc = jnp.zeros((1, 1), jnp.float32)
    corr_acc = jnp.zeros((1, 1), jnp.float32)
    for k in range(K):
        lat_k = lat[(t_in + k) * B:(t_in + k + 1) * B, :]        # contiguous (B, L)
        p_k = p_all[k * L:(k + 1) * L, :]                        # (L, B)
        scores = jnp.dot(lat_k, p_k, preferred_element_type=jnp.float32)  # (B, B)
        # log_softmax over dim=1 (rows), as nn.LogSoftmax(dim=1)
        m = jnp.max(scores, axis=1, keepdims=True)
        ls = scores - m - jnp.log(
            jnp.sum(jnp.exp(scores - m), axis=1, keepdims=True))
        # loss: sum of the diagonal of ls
        diag_ls = jnp.sum(jnp.where(eye, ls, 0.0), axis=0, keepdims=True)   # (1, B)
        loss_acc = loss_acc + jnp.sum(diag_ls, axis=1, keepdims=True)
        # accuracy: first-occurrence argmax over dim 0 == column index
        col_max = jnp.max(ls, axis=0, keepdims=True)                        # (1, B)
        first_max = jnp.min(jnp.where(ls >= col_max, row_idx, B),
                            axis=0, keepdims=True)                          # (1, B)
        corr_acc = corr_acc + jnp.sum(
            (first_max == col_ids).astype(jnp.float32), axis=1, keepdims=True)

    # ---- single final writes ----
    h_out_ref[...] = h
    stats_ref[0:1, 0:1] = loss_acc
    stats_ref[0:1, 1:2] = corr_acc


# ------------------------------ host wrapper -------------------------------

def prepare_params(params, timesteps_out):
    """One-time weight layout / dtype prep (kept OUT of the jitted forward)."""
    K = timesteps_out
    L = params["enc_w"].shape[1]
    H = params["gru_whh"].shape[1]
    return {
        "enc_w": params["enc_w"].astype(jnp.bfloat16),                 # (C*W, L)
        "enc_b": params["enc_b"].astype(jnp.float32),                  # (1, L)
        "wih_t": params["gru_wih"].T.astype(jnp.bfloat16),             # (L, 3H)
        "whh_t": params["gru_whh"].T.astype(jnp.bfloat16),             # (H, 3H)
        "bih": params["gru_bih"].astype(jnp.float32),                  # (1, 3H)
        "bhh": params["gru_bhh"].astype(jnp.float32),                  # (1, 3H)
        # pred_w (K, L, H) -> (H, K*L): column k*L+l holds W_k[l, :]
        "predw": jnp.transpose(params["pred_w"], (2, 0, 1))
                   .reshape(H, K * L).astype(jnp.bfloat16),
        "predb": params["pred_b"].reshape(K * L, 1).astype(jnp.float32),
    }


@functools.partial(jax.jit, static_argnames=("timesteps_in", "timesteps_out"))
def cpc_forward(x_windows, hidden, prepped, *, timesteps_in, timesteps_out):
    B, n_windows, C, W = x_windows.shape
    L = prepped["wih_t"].shape[0]
    H = prepped["whh_t"].shape[0]
    K = timesteps_out
    assert n_windows == timesteps_in + timesteps_out, \
        "timesteps in and out not matching total windows"

    # Time-major flat row order (row = t*B + b), matching x_windows.transpose(1,0)
    # in the PyTorch forward.  One XLA transpose outside the kernel keeps every
    # in-kernel slice contiguous.
    x_flat = jnp.transpose(x_windows, (1, 0, 2, 3)) \
                .reshape(n_windows * B, C * W).astype(jnp.bfloat16)
    h0 = hidden[0].astype(jnp.float32)

    operands = (x_flat, prepped["enc_w"], prepped["enc_b"], h0,
                prepped["wih_t"], prepped["whh_t"], prepped["bih"], prepped["bhh"],
                prepped["predw"], prepped["predb"])

    # --- advisory cost estimate + explicit VMEM budget (static Python ints) ---
    in_bytes = sum(int(a.size) * a.dtype.itemsize for a in operands)
    out_bytes = B * H * 4 + 2 * 4
    work_bytes = (n_windows * B * L + timesteps_in * B * 3 * H) * 4   # lat + gi (f32)
    vmem_limit = min(32 << 20, max(16 << 20, 4 * (in_bytes + out_bytes + work_bytes)))

    flops = int(
        2 * n_windows * B * (C * W) * L                    # encoder
        + 2 * timesteps_in * B * L * 3 * H                 # hoisted input gates
        + timesteps_in * (2 * B * H * 3 * H + 15 * B * H)  # recurrence
        + 2 * B * H * K * L                                # predictions
        + K * (2 * B * L * B + 8 * B * B))                 # scores + softmax
    transcendentals = int(timesteps_in * 3 * B * H + K * (B * B + B))
    cost = pl.CostEstimate(flops=flops, transcendentals=transcendentals,
                           bytes_accessed=int(in_bytes + out_bytes))

    vmem = pltpu.MemorySpace.VMEM
    h_new, stats = pl.pallas_call(
        cpc_fused_kernel,
        out_shape=(jax.ShapeDtypeStruct((B, H), jnp.float32),
                   jax.ShapeDtypeStruct((1, 2), jnp.float32)),
        in_specs=[pl.BlockSpec(memory_space=vmem)] * len(operands),
        out_specs=(pl.BlockSpec(memory_space=vmem),
                   pl.BlockSpec(memory_space=vmem)),
        input_output_aliases={3: 0},        # h0 -> new hidden state
        compiler_params=pltpu.CompilerParams(vmem_limit_bytes=vmem_limit),
        cost_estimate=cost,
    )(*operands)

    loss = stats[0, 0] / (B * K * -1.0)
    accuracy = stats[0, 1] / (B * K)
    new_hidden = h_new[None]                # (1, B, H), like PyTorch GRU hidden
    return accuracy, loss, new_hidden


# ------------------------- pure-JAX reference check -------------------------

def cpc_reference(x_windows, hidden, params, timesteps_in, timesteps_out):
    B, n_windows, C, W = x_windows.shape
    L = params["enc_w"].shape[1]
    H = params["gru_whh"].shape[1]
    xw = jnp.transpose(x_windows, (1, 0, 2, 3)).reshape(n_windows * B, C * W)
    lat = jax.nn.relu(xw @ params["enc_w"] + params["enc_b"])
    lat = lat.reshape(n_windows, B, L)
    h = hidden[0]
    for t in range(timesteps_in):
        gi = lat[t] @ params["gru_wih"].T + params["gru_bih"]
        gh = h @ params["gru_whh"].T + params["gru_bhh"]
        r = jax.nn.sigmoid(gi[:, :H] + gh[:, :H])
        z = jax.nn.sigmoid(gi[:, H:2 * H] + gh[:, H:2 * H])
        n = jnp.tanh(gi[:, 2 * H:] + r * gh[:, 2 * H:])
        h = (1.0 - z) * n + z * h
    loss = jnp.float32(0.0)
    correct = jnp.float32(0.0)
    for k in range(timesteps_out):
        lat_k = lat[timesteps_in + k]
        pred_k = h @ params["pred_w"][k].T + params["pred_b"][k]
        sm = jax.nn.log_softmax(lat_k @ pred_k.T, axis=1)
        correct += jnp.sum((jnp.argmax(sm, axis=0) == jnp.arange(B)).astype(jnp.float32))
        loss += jnp.sum(jnp.diag(sm))
    loss = loss / (B * timesteps_out * -1.0)
    accuracy = correct / (B * timesteps_out)
    return accuracy, loss, h[None]


# ----------------------------------- main -----------------------------------

if __name__ == "__main__":
    # small shapes consistent with the module
    B = 4                 # batch
    C = 3                 # in_channels
    W = 16                # window_size
    L = 32                # latent_size
    H = 32                # GRU hidden size
    T_IN, T_OUT = 6, 2
    N_WINDOWS = T_IN + T_OUT

    key = jax.random.PRNGKey(0)
    ks = jax.random.split(key, 10)

    params = {
        "enc_w":   jax.random.normal(ks[0], (C * W, L), jnp.float32) * 0.1,
        "enc_b":   jax.random.normal(ks[1], (1, L), jnp.float32) * 0.1,
        "gru_wih": jax.random.normal(ks[2], (3 * H, L), jnp.float32) * 0.1,
        "gru_whh": jax.random.normal(ks[3], (3 * H, H), jnp.float32) * 0.1,
        "gru_bih": jax.random.normal(ks[4], (1, 3 * H), jnp.float32) * 0.1,
        "gru_bhh": jax.random.normal(ks[5], (1, 3 * H), jnp.float32) * 0.1,
        "pred_w":  jax.random.normal(ks[6], (T_OUT, L, H), jnp.float32) * 0.1,
        "pred_b":  jax.random.normal(ks[7], (T_OUT, L), jnp.float32) * 0.1,
    }

    x_windows = jax.random.normal(ks[8], (B, N_WINDOWS, C, W), jnp.float32)
    hidden = jnp.zeros((1, B, H), jnp.float32)

    # one-time weight prep (outside the jitted step)
    prepped = jax.block_until_ready(prepare_params(params, T_OUT))

    accuracy, loss, new_hidden = cpc_forward(
        x_windows, hidden, prepped, timesteps_in=T_IN, timesteps_out=T_OUT)
    jax.block_until_ready((accuracy, loss, new_hidden))

    # sanity check against a pure-f32 JAX reference of the PyTorch forward
    # (kernel uses bf16 MXU operands, hence the loosened tolerance)
    acc_ref, loss_ref, hid_ref = cpc_reference(
        x_windows, hidden, params, T_IN, T_OUT)
    assert jnp.allclose(loss, loss_ref, rtol=5e-2, atol=5e-2), (loss, loss_ref)
    assert jnp.allclose(new_hidden, hid_ref, rtol=5e-2, atol=5e-2)
    assert 0.0 <= float(accuracy) <= 1.0
    # discrete argmax count: allow at most one flipped argmax from bf16 rounding
    assert abs(float(accuracy) - float(acc_ref)) <= 1.0 / (B * T_OUT) + 1e-6

    print("KERNEL_OK")
</pallas_src>

<mosaic_0001>
module attributes {stable_mosaic.version = 11 : i64} {
  func.func @cpc_fused_kernel(%arg0: memref<32x48xbf16, #tpu.memory_space<vmem>>, %arg1: memref<48x32xbf16, #tpu.memory_space<vmem>>, %arg2: memref<1x32xf32, #tpu.memory_space<vmem>>, %arg3: memref<4x32xf32, #tpu.memory_space<vmem>>, %arg4: memref<32x96xbf16, #tpu.memory_space<vmem>>, %arg5: memref<32x96xbf16, #tpu.memory_space<vmem>>, %arg6: memref<1x96xf32, #tpu.memory_space<vmem>>, %arg7: memref<1x96xf32, #tpu.memory_space<vmem>>, %arg8: memref<32x64xbf16, #tpu.memory_space<vmem>>, %arg9: memref<64x1xf32, #tpu.memory_space<vmem>>, %arg10: memref<4x32xf32, #tpu.memory_space<vmem>>, %arg11: memref<1x2xf32, #tpu.memory_space<vmem>>) attributes {dimension_semantics = [], scalar_prefetch = 0 : i64, scratch_operands = 0 : i64, tpu.core_type = #tpu.core_type<tc>} {
    %c0 = arith.constant 0 : index
    %c0_0 = arith.constant 0 : index
    %0 = vector.load %arg0[%c0, %c0_0] : memref<32x48xbf16, #tpu.memory_space<vmem>>, vector<32x48xbf16>
    %c0_1 = arith.constant 0 : index
    %c0_2 = arith.constant 0 : index
    %1 = vector.load %arg1[%c0_1, %c0_2] : memref<48x32xbf16, #tpu.memory_space<vmem>>, vector<48x32xbf16>
    %cst = arith.constant dense<0.000000e+00> : vector<32x32xf32>
    %2 = tpu.matmul %0, %1, %cst {dimension_numbers = #tpu.dot_dimension_numbers<[1], [0], [0], [1], [0, 0, 1, 1], [], []>} : vector<32x48xbf16>, vector<48x32xbf16>, vector<32x32xf32> -> vector<32x32xf32>
    %c0_3 = arith.constant 0 : index
    %c0_4 = arith.constant 0 : index
    %3 = vector.load %arg2[%c0_3, %c0_4] : memref<1x32xf32, #tpu.memory_space<vmem>>, vector<1x32xf32>
    %4 = vector.broadcast %3 : vector<1x32xf32> to vector<32x32xf32>
    %5 = arith.addf %2, %4 : vector<32x32xf32>
    %cst_5 = arith.constant 0.000000e+00 : f32
    %6 = vector.broadcast %cst_5 : f32 to vector<32x32xf32>
    %7 = arith.maximumf %5, %6 : vector<32x32xf32>
    %8 = vector.extract_strided_slice %7 {offsets = [0, 0], sizes = [24, 32], strides = [1, 1]} : vector<32x32xf32> to vector<24x32xf32>
    %9 = arith.truncf %8 : vector<24x32xf32> to vector<24x32xbf16>
    %c0_6 = arith.constant 0 : index
    %c0_7 = arith.constant 0 : index
    %10 = vector.load %arg4[%c0_6, %c0_7] : memref<32x96xbf16, #tpu.memory_space<vmem>>, vector<32x96xbf16>
    %cst_8 = arith.constant dense<0.000000e+00> : vector<24x96xf32>
    %11 = tpu.matmul %9, %10, %cst_8 {dimension_numbers = #tpu.dot_dimension_numbers<[1], [0], [0], [1], [0, 0, 1, 1], [], []>} : vector<24x32xbf16>, vector<32x96xbf16>, vector<24x96xf32> -> vector<24x96xf32>
    %c0_9 = arith.constant 0 : index
    %c0_10 = arith.constant 0 : index
    %12 = vector.load %arg6[%c0_9, %c0_10] : memref<1x96xf32, #tpu.memory_space<vmem>>, vector<1x96xf32>
    %13 = vector.broadcast %12 : vector<1x96xf32> to vector<24x96xf32>
    %14 = arith.addf %11, %13 : vector<24x96xf32>
    %c0_11 = arith.constant 0 : index
    %c0_12 = arith.constant 0 : index
    %15 = vector.load %arg5[%c0_11, %c0_12] : memref<32x96xbf16, #tpu.memory_space<vmem>>, vector<32x96xbf16>
    %c0_13 = arith.constant 0 : index
    %c0_14 = arith.constant 0 : index
    %16 = vector.load %arg7[%c0_13, %c0_14] : memref<1x96xf32, #tpu.memory_space<vmem>>, vector<1x96xf32>
    %c0_15 = arith.constant 0 : index
    %c0_16 = arith.constant 0 : index
    %17 = vector.load %arg3[%c0_15, %c0_16] : memref<4x32xf32, #tpu.memory_space<vmem>>, vector<4x32xf32>
    %18 = vector.extract_strided_slice %14 {offsets = [0, 0], sizes = [4, 96], strides = [1, 1]} : vector<24x96xf32> to vector<4x96xf32>
    %19 = arith.truncf %17 : vector<4x32xf32> to vector<4x32xbf16>
    %cst_17 = arith.constant dense<0.000000e+00> : vector<4x96xf32>
    %20 = tpu.matmul %19, %15, %cst_17 {dimension_numbers = #tpu.dot_dimension_numbers<[1], [0], [0], [1], [0, 0, 1, 1], [], []>} : vector<4x32xbf16>, vector<32x96xbf16>, vector<4x96xf32> -> vector<4x96xf32>
    %21 = vector.broadcast %16 : vector<1x96xf32> to vector<4x96xf32>
    %22 = arith.addf %20, %21 : vector<4x96xf32>
    %23 = vector.extract_strided_slice %18 {offsets = [0, 0], sizes = [4, 32], strides = [1, 1]} : vector<4x96xf32> to vector<4x32xf32>
    %24 = vector.extract_strided_slice %22 {offsets = [0, 0], sizes = [4, 32], strides = [1, 1]} : vector<4x96xf32> to vector<4x32xf32>
    %25 = arith.addf %23, %24 : vector<4x32xf32>
    %26 = arith.negf %25 : vector<4x32xf32>
    %27 = math.exp %26 : vector<4x32xf32>
    %cst_18 = arith.constant 1.000000e+00 : f32
    %28 = vector.broadcast %cst_18 : f32 to vector<4x32xf32>
    %29 = arith.addf %28, %27 : vector<4x32xf32>
    %30 = arith.divf %28, %29 : vector<4x32xf32>
    %31 = vector.extract_strided_slice %18 {offsets = [0, 32], sizes = [4, 32], strides = [1, 1]} : vector<4x96xf32> to vector<4x32xf32>
    %32 = vector.extract_strided_slice %22 {offsets = [0, 32], sizes = [4, 32], strides = [1, 1]} : vector<4x96xf32> to vector<4x32xf32>
    %33 = arith.addf %31, %32 : vector<4x32xf32>
    %34 = arith.negf %33 : vector<4x32xf32>
    %35 = math.exp %34 : vector<4x32xf32>
    %cst_19 = arith.constant 1.000000e+00 : f32
    %36 = vector.broadcast %cst_19 : f32 to vector<4x32xf32>
    %37 = arith.addf %36, %35 : vector<4x32xf32>
    %38 = arith.divf %36, %37 : vector<4x32xf32>
    %39 = vector.extract_strided_slice %18 {offsets = [0, 64], sizes = [4, 32], strides = [1, 1]} : vector<4x96xf32> to vector<4x32xf32>
    %40 = vector.extract_strided_slice %22 {offsets = [0, 64], sizes = [4, 32], strides = [1, 1]} : vector<4x96xf32> to vector<4x32xf32>
    %41 = arith.mulf %30, %40 : vector<4x32xf32>
    %42 = arith.addf %39, %41 : vector<4x32xf32>
    %43 = math.tanh %42 : vector<4x32xf32>
    %cst_20 = arith.constant 1.000000e+00 : f32
    %44 = vector.broadcast %cst_20 : f32 to vector<4x32xf32>
    %45 = arith.subf %44, %38 : vector<4x32xf32>
    %46 = arith.mulf %45, %43 : vector<4x32xf32>
    %47 = arith.mulf %38, %17 : vector<4x32xf32>
    %48 = arith.addf %46, %47 : vector<4x32xf32>
    %49 = vector.extract_strided_slice %14 {offsets = [4, 0], sizes = [4, 96], strides = [1, 1]} : vector<24x96xf32> to vector<4x96xf32>
    %50 = arith.truncf %48 : vector<4x32xf32> to vector<4x32xbf16>
    %cst_21 = arith.constant dense<0.000000e+00> : vector<4x96xf32>
    %51 = tpu.matmul %50, %15, %cst_21 {dimension_numbers = #tpu.dot_dimension_numbers<[1], [0], [0], [1], [0, 0, 1, 1], [], []>} : vector<4x32xbf16>, vector<32x96xbf16>, vector<4x96xf32> -> vector<4x96xf32>
    %52 = vector.broadcast %16 : vector<1x96xf32> to vector<4x96xf32>
    %53 = arith.addf %51, %52 : vector<4x96xf32>
    %54 = vector.extract_strided_slice %49 {offsets = [0, 0], sizes = [4, 32], strides = [1, 1]} : vector<4x96xf32> to vector<4x32xf32>
    %55 = vector.extract_strided_slice %53 {offsets = [0, 0], sizes = [4, 32], strides = [1, 1]} : vector<4x96xf32> to vector<4x32xf32>
    %56 = arith.addf %54, %55 : vector<4x32xf32>
    %57 = arith.negf %56 : vector<4x32xf32>
    %58 = math.exp %57 : vector<4x32xf32>
    %cst_22 = arith.constant 1.000000e+00 : f32
    %59 = vector.broadcast %cst_22 : f32 to vector<4x32xf32>
    %60 = arith.addf %59, %58 : vector<4x32xf32>
    %61 = arith.divf %59, %60 : vector<4x32xf32>
    %62 = vector.extract_strided_slice %49 {offsets = [0, 32], sizes = [4, 32], strides = [1, 1]} : vector<4x96xf32> to vector<4x32xf32>
    %63 = vector.extract_strided_slice %53 {offsets = [0, 32], sizes = [4, 32], strides = [1, 1]} : vector<4x96xf32> to vector<4x32xf32>
    %64 = arith.addf %62, %63 : vector<4x32xf32>
    %65 = arith.negf %64 : vector<4x32xf32>
    %66 = math.exp %65 : vector<4x32xf32>
    %cst_23 = arith.constant 1.000000e+00 : f32
    %67 = vector.broadcast %cst_23 : f32 to vector<4x32xf32>
    %68 = arith.addf %67, %66 : vector<4x32xf32>
    %69 = arith.divf %67, %68 : vector<4x32xf32>
    %70 = vector.extract_strided_slice %49 {offsets = [0, 64], sizes = [4, 32], strides = [1, 1]} : vector<4x96xf32> to vector<4x32xf32>
    %71 = vector.extract_strided_slice %53 {offsets = [0, 64], sizes = [4, 32], strides = [1, 1]} : vector<4x96xf32> to vector<4x32xf32>
    %72 = arith.mulf %61, %71 : vector<4x32xf32>
    %73 = arith.addf %70, %72 : vector<4x32xf32>
    %74 = math.tanh %73 : vector<4x32xf32>
    %cst_24 = arith.constant 1.000000e+00 : f32
    %75 = vector.broadcast %cst_24 : f32 to vector<4x32xf32>
    %76 = arith.subf %75, %69 : vector<4x32xf32>
    %77 = arith.mulf %76, %74 : vector<4x32xf32>
    %78 = arith.mulf %69, %48 : vector<4x32xf32>
    %79 = arith.addf %77, %78 : vector<4x32xf32>
    %80 = vector.extract_strided_slice %14 {offsets = [8, 0], sizes = [4, 96], strides = [1, 1]} : vector<24x96xf32> to vector<4x96xf32>
    %81 = arith.truncf %79 : vector<4x32xf32> to vector<4x32xbf16>
    %cst_25 = arith.constant dense<0.000000e+00> : vector<4x96xf32>
    %82 = tpu.matmul %81, %15, %cst_25 {dimension_numbers = #tpu.dot_dimension_numbers<[1], [0], [0], [1], [0, 0, 1, 1], [], []>} : vector<4x32xbf16>, vector<32x96xbf16>, vector<4x96xf32> -> vector<4x96xf32>
    %83 = vector.broadcast %16 : vector<1x96xf32> to vector<4x96xf32>
    %84 = arith.addf %82, %83 : vector<4x96xf32>
    %85 = vector.extract_strided_slice %80 {offsets = [0, 0], sizes = [4, 32], strides = [1, 1]} : vector<4x96xf32> to vector<4x32xf32>
    %86 = vector.extract_strided_slice %84 {offsets = [0, 0], sizes = [4, 32], strides = [1, 1]} : vector<4x96xf32> to vector<4x32xf32>
    %87 = arith.addf %85, %86 : vector<4x32xf32>
    %88 = arith.negf %87 : vector<4x32xf32>
    %89 = math.exp %88 : vector<4x32xf32>
    %cst_26 = arith.constant 1.000000e+00 : f32
    %90 = vector.broadcast %cst_26 : f32 to vector<4x32xf32>
    %91 = arith.addf %90, %89 : vector<4x32xf32>
    %92 = arith.divf %90, %91 : vector<4x32xf32>
    %93 = vector.extract_strided_slice %80 {offsets = [0, 32], sizes = [4, 32], strides = [1, 1]} : vector<4x96xf32> to vector<4x32xf32>
    %94 = vector.extract_strided_slice %84 {offsets = [0, 32], sizes = [4, 32], strides = [1, 1]} : vector<4x96xf32> to vector<4x32xf32>
    %95 = arith.addf %93, %94 : vector<4x32xf32>
    %96 = arith.negf %95 : vector<4x32xf32>
    %97 = math.exp %96 : vector<4x32xf32>
    %cst_27 = arith.constant 1.000000e+00 : f32
    %98 = vector.broadcast %cst_27 : f32 to vector<4x32xf32>
    %99 = arith.addf %98, %97 : vector<4x32xf32>
    %100 = arith.divf %98, %99 : vector<4x32xf32>
    %101 = vector.extract_strided_slice %80 {offsets = [0, 64], sizes = [4, 32], strides = [1, 1]} : vector<4x96xf32> to vector<4x32xf32>
    %102 = vector.extract_strided_slice %84 {offsets = [0, 64], sizes = [4, 32], strides = [1, 1]} : vector<4x96xf32> to vector<4x32xf32>
    %103 = arith.mulf %92, %102 : vector<4x32xf32>
    %104 = arith.addf %101, %103 : vector<4x32xf32>
    %105 = math.tanh %104 : vector<4x32xf32>
    %cst_28 = arith.constant 1.000000e+00 : f32
    %106 = vector.broadcast %cst_28 : f32 to vector<4x32xf32>
    %107 = arith.subf %106, %100 : vector<4x32xf32>
    %108 = arith.mulf %107, %105 : vector<4x32xf32>
    %109 = arith.mulf %100, %79 : vector<4x32xf32>
    %110 = arith.addf %108, %109 : vector<4x32xf32>
    %111 = vector.extract_strided_slice %14 {offsets = [12, 0], sizes = [4, 96], strides = [1, 1]} : vector<24x96xf32> to vector<4x96xf32>
    %112 = arith.truncf %110 : vector<4x32xf32> to vector<4x32xbf16>
    %cst_29 = arith.constant dense<0.000000e+00> : vector<4x96xf32>
    %113 = tpu.matmul %112, %15, %cst_29 {dimension_numbers = #tpu.dot_dimension_numbers<[1], [0], [0], [1], [0, 0, 1, 1], [], []>} : vector<4x32xbf16>, vector<32x96xbf16>, vector<4x96xf32> -> vector<4x96xf32>
    %114 = vector.broadcast %16 : vector<1x96xf32> to vector<4x96xf32>
    %115 = arith.addf %113, %114 : vector<4x96xf32>
    %116 = vector.extract_strided_slice %111 {offsets = [0, 0], sizes = [4, 32], strides = [1, 1]} : vector<4x96xf32> to vector<4x32xf32>
    %117 = vector.extract_strided_slice %115 {offsets = [0, 0], sizes = [4, 32], strides = [1, 1]} : vector<4x96xf32> to vector<4x32xf32>
    %118 = arith.addf %116, %117 : vector<4x32xf32>
    %119 = arith.negf %118 : vector<4x32xf32>
    %120 = math.exp %119 : vector<4x32xf32>
    %cst_30 = arith.constant 1.000000e+00 : f32
    %121 = vector.broadcast %cst_30 : f32 to vector<4x32xf32>
    %122 = arith.addf %121, %120 : vector<4x32xf32>
    %123 = arith.divf %121, %122 : vector<4x32xf32>
    %124 = vector.extract_strided_slice %111 {offsets = [0, 32], sizes = [4, 32], strides = [1, 1]} : vector<4x96xf32> to vector<4x32xf32>
    %125 = vector.extract_strided_slice %115 {offsets = [0, 32], sizes = [4, 32], strides = [1, 1]} : vector<4x96xf32> to vector<4x32xf32>
    %126 = arith.addf %124, %125 : vector<4x32xf32>
    %127 = arith.negf %126 : vector<4x32xf32>
    %128 = math.exp %127 : vector<4x32xf32>
    %cst_31 = arith.constant 1.000000e+00 : f32
    %129 = vector.broadcast %cst_31 : f32 to vector<4x32xf32>
    %130 = arith.addf %129, %128 : vector<4x32xf32>
    %131 = arith.divf %129, %130 : vector<4x32xf32>
    %132 = vector.extract_strided_slice %111 {offsets = [0, 64], sizes = [4, 32], strides = [1, 1]} : vector<4x96xf32> to vector<4x32xf32>
    %133 = vector.extract_strided_slice %115 {offsets = [0, 64], sizes = [4, 32], strides = [1, 1]} : vector<4x96xf32> to vector<4x32xf32>
    %134 = arith.mulf %123, %133 : vector<4x32xf32>
    %135 = arith.addf %132, %134 : vector<4x32xf32>
    %136 = math.tanh %135 : vector<4x32xf32>
    %cst_32 = arith.constant 1.000000e+00 : f32
    %137 = vector.broadcast %cst_32 : f32 to vector<4x32xf32>
    %138 = arith.subf %137, %131 : vector<4x32xf32>
    %139 = arith.mulf %138, %136 : vector<4x32xf32>
    %140 = arith.mulf %131, %110 : vector<4x32xf32>
    %141 = arith.addf %139, %140 : vector<4x32xf32>
    %142 = vector.extract_strided_slice %14 {offsets = [16, 0], sizes = [4, 96], strides = [1, 1]} : vector<24x96xf32> to vector<4x96xf32>
    %143 = arith.truncf %141 : vector<4x32xf32> to vector<4x32xbf16>
    %cst_33 = arith.constant dense<0.000000e+00> : vector<4x96xf32>
    %144 = tpu.matmul %143, %15, %cst_33 {dimension_numbers = #tpu.dot_dimension_numbers<[1], [0], [0], [1], [0, 0, 1, 1], [], []>} : vector<4x32xbf16>, vector<32x96xbf16>, vector<4x96xf32> -> vector<4x96xf32>
    %145 = vector.broadcast %16 : vector<1x96xf32> to vector<4x96xf32>
    %146 = arith.addf %144, %145 : vector<4x96xf32>
    %147 = vector.extract_strided_slice %142 {offsets = [0, 0], sizes = [4, 32], strides = [1, 1]} : vector<4x96xf32> to vector<4x32xf32>
    %148 = vector.extract_strided_slice %146 {offsets = [0, 0], sizes = [4, 32], strides = [1, 1]} : vector<4x96xf32> to vector<4x32xf32>
    %149 = arith.addf %147, %148 : vector<4x32xf32>
    %150 = arith.negf %149 : vector<4x32xf32>
    %151 = math.exp %150 : vector<4x32xf32>
    %cst_34 = arith.constant 1.000000e+00 : f32
    %152 = vector.broadcast %cst_34 : f32 to vector<4x32xf32>
    %153 = arith.addf %152, %151 : vector<4x32xf32>
    %154 = arith.divf %152, %153 : vector<4x32xf32>
    %155 = vector.extract_strided_slice %142 {offsets = [0, 32], sizes = [4, 32], strides = [1, 1]} : vector<4x96xf32> to vector<4x32xf32>
    %156 = vector.extract_strided_slice %146 {offsets = [0, 32], sizes = [4, 32], strides = [1, 1]} : vector<4x96xf32> to vector<4x32xf32>
    %157 = arith.addf %155, %156 : vector<4x32xf32>
    %158 = arith.negf %157 : vector<4x32xf32>
    %159 = math.exp %158 : vector<4x32xf32>
    %cst_35 = arith.constant 1.000000e+00 : f32
    %160 = vector.broadcast %cst_35 : f32 to vector<4x32xf32>
    %161 = arith.addf %160, %159 : vector<4x32xf32>
    %162 = arith.divf %160, %161 : vector<4x32xf32>
    %163 = vector.extract_strided_slice %142 {offsets = [0, 64], sizes = [4, 32], strides = [1, 1]} : vector<4x96xf32> to vector<4x32xf32>
    %164 = vector.extract_strided_slice %146 {offsets = [0, 64], sizes = [4, 32], strides = [1, 1]} : vector<4x96xf32> to vector<4x32xf32>
    %165 = arith.mulf %154, %164 : vector<4x32xf32>
    %166 = arith.addf %163, %165 : vector<4x32xf32>
    %167 = math.tanh %166 : vector<4x32xf32>
    %cst_36 = arith.constant 1.000000e+00 : f32
    %168 = vector.broadcast %cst_36 : f32 to vector<4x32xf32>
    %169 = arith.subf %168, %162 : vector<4x32xf32>
    %170 = arith.mulf %169, %167 : vector<4x32xf32>
    %171 = arith.mulf %162, %141 : vector<4x32xf32>
    %172 = arith.addf %170, %171 : vector<4x32xf32>
    %173 = vector.extract_strided_slice %14 {offsets = [20, 0], sizes = [4, 96], strides = [1, 1]} : vector<24x96xf32> to vector<4x96xf32>
    %174 = arith.truncf %172 : vector<4x32xf32> to vector<4x32xbf16>
    %cst_37 = arith.constant dense<0.000000e+00> : vector<4x96xf32>
    %175 = tpu.matmul %174, %15, %cst_37 {dimension_numbers = #tpu.dot_dimension_numbers<[1], [0], [0], [1], [0, 0, 1, 1], [], []>} : vector<4x32xbf16>, vector<32x96xbf16>, vector<4x96xf32> -> vector<4x96xf32>
    %176 = vector.broadcast %16 : vector<1x96xf32> to vector<4x96xf32>
    %177 = arith.addf %175, %176 : vector<4x96xf32>
    %178 = vector.extract_strided_slice %173 {offsets = [0, 0], sizes = [4, 32], strides = [1, 1]} : vector<4x96xf32> to vector<4x32xf32>
    %179 = vector.extract_strided_slice %177 {offsets = [0, 0], sizes = [4, 32], strides = [1, 1]} : vector<4x96xf32> to vector<4x32xf32>
    %180 = arith.addf %178, %179 : vector<4x32xf32>
    %181 = arith.negf %180 : vector<4x32xf32>
    %182 = math.exp %181 : vector<4x32xf32>
    %cst_38 = arith.constant 1.000000e+00 : f32
    %183 = vector.broadcast %cst_38 : f32 to vector<4x32xf32>
    %184 = arith.addf %183, %182 : vector<4x32xf32>
    %185 = arith.divf %183, %184 : vector<4x32xf32>
    %186 = vector.extract_strided_slice %173 {offsets = [0, 32], sizes = [4, 32], strides = [1, 1]} : vector<4x96xf32> to vector<4x32xf32>
    %187 = vector.extract_strided_slice %177 {offsets = [0, 32], sizes = [4, 32], strides = [1, 1]} : vector<4x96xf32> to vector<4x32xf32>
    %188 = arith.addf %186, %187 : vector<4x32xf32>
    %189 = arith.negf %188 : vector<4x32xf32>
    %190 = math.exp %189 : vector<4x32xf32>
    %cst_39 = arith.constant 1.000000e+00 : f32
    %191 = vector.broadcast %cst_39 : f32 to vector<4x32xf32>
    %192 = arith.addf %191, %190 : vector<4x32xf32>
    %193 = arith.divf %191, %192 : vector<4x32xf32>
    %194 = vector.extract_strided_slice %173 {offsets = [0, 64], sizes = [4, 32], strides = [1, 1]} : vector<4x96xf32> to vector<4x32xf32>
    %195 = vector.extract_strided_slice %177 {offsets = [0, 64], sizes = [4, 32], strides = [1, 1]} : vector<4x96xf32> to vector<4x32xf32>
    %196 = arith.mulf %185, %195 : vector<4x32xf32>
    %197 = arith.addf %194, %196 : vector<4x32xf32>
    %198 = math.tanh %197 : vector<4x32xf32>
    %cst_40 = arith.constant 1.000000e+00 : f32
    %199 = vector.broadcast %cst_40 : f32 to vector<4x32xf32>
    %200 = arith.subf %199, %193 : vector<4x32xf32>
    %201 = arith.mulf %200, %198 : vector<4x32xf32>
    %202 = arith.mulf %193, %172 : vector<4x32xf32>
    %203 = arith.addf %201, %202 : vector<4x32xf32>
    %c0_41 = arith.constant 0 : index
    %c0_42 = arith.constant 0 : index
    %204 = vector.load %arg8[%c0_41, %c0_42] : memref<32x64xbf16, #tpu.memory_space<vmem>>, vector<32x64xbf16>
    %205 = arith.truncf %203 : vector<4x32xf32> to vector<4x32xbf16>
    %cst_43 = arith.constant dense<0.000000e+00> : vector<64x4xf32>
    %206 = tpu.matmul %204, %205, %cst_43 {dimension_numbers = #tpu.dot_dimension_numbers<[0], [1], [1], [0], [0, 1, 1, 0], [], []>} : vector<32x64xbf16>, vector<4x32xbf16>, vector<64x4xf32> -> vector<64x4xf32>
    %c0_44 = arith.constant 0 : index
    %c0_45 = arith.constant 0 : index
    %207 = vector.load %arg9[%c0_44, %c0_45] : memref<64x1xf32, #tpu.memory_space<vmem>>, vector<64x1xf32>
    %208 = vector.broadcast %207 : vector<64x1xf32> to vector<64x4xf32>
    %209 = arith.addf %206, %208 : vector<64x4xf32>
    %210 = tpu.iota {dimensions = array<i32: 0>} : vector<4x4xi32>
    %211 = tpu.iota {dimensions = array<i32: 1>} : vector<4x4xi32>
    %212 = arith.cmpi eq, %210, %211 : vector<4x4xi32>
    %213 = tpu.iota {dimensions = array<i32: 1>} : vector<1x4xi32>
    %cst_46 = arith.constant 0.000000e+00 : f32
    %214 = vector.broadcast %cst_46 : f32 to vector<1x1xf32>
    %cst_47 = arith.constant 0.000000e+00 : f32
    %215 = vector.broadcast %cst_47 : f32 to vector<1x1xf32>
    %216 = vector.extract_strided_slice %7 {offsets = [24, 0], sizes = [4, 32], strides = [1, 1]} : vector<32x32xf32> to vector<4x32xf32>
    %217 = vector.extract_strided_slice %209 {offsets = [0, 0], sizes = [32, 4], strides = [1, 1]} : vector<64x4xf32> to vector<32x4xf32>
    %cst_48 = arith.constant dense<0.000000e+00> : vector<4x4xf32>
    %218 = tpu.matmul %216, %217, %cst_48 {dimension_numbers = #tpu.dot_dimension_numbers<[1], [0], [0], [1], [0, 0, 1, 1], [], []>} : vector<4x32xf32>, vector<32x4xf32>, vector<4x4xf32> -> vector<4x4xf32>
    %cst_49 = arith.constant dense<0xFF800000> : vector<4xf32>
    %219 = vector.multi_reduction <maximumf>, %218, %cst_49 [1] : vector<4x4xf32> to vector<4xf32>
    %220 = vector.shape_cast %219 : vector<4xf32> to vector<4x1xf32>
    %221 = vector.broadcast %220 : vector<4x1xf32> to vector<4x4xf32>
    %222 = arith.subf %218, %221 : vector<4x4xf32>
    %223 = vector.broadcast %220 : vector<4x1xf32> to vector<4x4xf32>
    %224 = arith.subf %218, %223 : vector<4x4xf32>
    %225 = math.exp %224 : vector<4x4xf32>
    %cst_50 = arith.constant dense<0.000000e+00> : vector<4xf32>
    %226 = vector.multi_reduction <add>, %225, %cst_50 [1] : vector<4x4xf32> to vector<4xf32>
    %227 = vector.shape_cast %226 : vector<4xf32> to vector<4x1xf32>
    %228 = math.log %227 : vector<4x1xf32>
    %229 = vector.broadcast %228 : vector<4x1xf32> to vector<4x4xf32>
    %230 = arith.subf %222, %229 : vector<4x4xf32>
    %cst_51 = arith.constant 0.000000e+00 : f32
    %231 = vector.broadcast %cst_51 : f32 to vector<4x4xf32>
    %232 = arith.select %212, %230, %231 : vector<4x4xi1>, vector<4x4xf32>
    %cst_52 = arith.constant dense<0.000000e+00> : vector<4xf32>
    %233 = vector.multi_reduction <add>, %232, %cst_52 [0] : vector<4x4xf32> to vector<4xf32>
    %234 = vector.shape_cast %233 : vector<4xf32> to vector<1x4xf32>
    %cst_53 = arith.constant dense<0.000000e+00> : vector<1xf32>
    %235 = vector.multi_reduction <add>, %234, %cst_53 [1] : vector<1x4xf32> to vector<1xf32>
    %236 = vector.shape_cast %235 : vector<1xf32> to vector<1x1xf32>
    %237 = arith.addf %214, %236 : vector<1x1xf32>
    %cst_54 = arith.constant dense<0xFF800000> : vector<4xf32>
    %238 = vector.multi_reduction <maximumf>, %230, %cst_54 [0] : vector<4x4xf32> to vector<4xf32>
    %239 = vector.shape_cast %238 : vector<4xf32> to vector<1x4xf32>
    %240 = vector.broadcast %239 : vector<1x4xf32> to vector<4x4xf32>
    %241 = arith.cmpf oge, %230, %240 : vector<4x4xf32>
    %c4_i32 = arith.constant 4 : i32
    %242 = vector.broadcast %c4_i32 : i32 to vector<4x4xi32>
    %243 = arith.select %241, %210, %242 : vector<4x4xi1>, vector<4x4xi32>
    %cst_55 = arith.constant dense<2147483647> : vector<4xi32>
    %244 = vector.multi_reduction <minsi>, %243, %cst_55 [0] : vector<4x4xi32> to vector<4xi32>
    %245 = vector.shape_cast %244 : vector<4xi32> to vector<1x4xi32>
    %246 = arith.cmpi eq, %245, %213 : vector<1x4xi32>
    %247 = arith.extui %246 : vector<1x4xi1> to vector<1x4xi32>
    %248 = arith.sitofp %247 : vector<1x4xi32> to vector<1x4xf32>
    %cst_56 = arith.constant dense<0.000000e+00> : vector<1xf32>
    %249 = vector.multi_reduction <add>, %248, %cst_56 [1] : vector<1x4xf32> to vector<1xf32>
    %250 = vector.shape_cast %249 : vector<1xf32> to vector<1x1xf32>
    %251 = arith.addf %215, %250 : vector<1x1xf32>
    %252 = vector.extract_strided_slice %7 {offsets = [28, 0], sizes = [4, 32], strides = [1, 1]} : vector<32x32xf32> to vector<4x32xf32>
    %253 = vector.extract_strided_slice %209 {offsets = [32, 0], sizes = [32, 4], strides = [1, 1]} : vector<64x4xf32> to vector<32x4xf32>
    %cst_57 = arith.constant dense<0.000000e+00> : vector<4x4xf32>
    %254 = tpu.matmul %252, %253, %cst_57 {dimension_numbers = #tpu.dot_dimension_numbers<[1], [0], [0], [1], [0, 0, 1, 1], [], []>} : vector<4x32xf32>, vector<32x4xf32>, vector<4x4xf32> -> vector<4x4xf32>
    %cst_58 = arith.constant dense<0xFF800000> : vector<4xf32>
    %255 = vector.multi_reduction <maximumf>, %254, %cst_58 [1] : vector<4x4xf32> to vector<4xf32>
    %256 = vector.shape_cast %255 : vector<4xf32> to vector<4x1xf32>
    %257 = vector.broadcast %256 : vector<4x1xf32> to vector<4x4xf32>
    %258 = arith.subf %254, %257 : vector<4x4xf32>
    %259 = vector.broadcast %256 : vector<4x1xf32> to vector<4x4xf32>
    %260 = arith.subf %254, %259 : vector<4x4xf32>
    %261 = math.exp %260 : vector<4x4xf32>
    %cst_59 = arith.constant dense<0.000000e+00> : vector<4xf32>
    %262 = vector.multi_reduction <add>, %261, %cst_59 [1] : vector<4x4xf32> to vector<4xf32>
    %263 = vector.shape_cast %262 : vector<4xf32> to vector<4x1xf32>
    %264 = math.log %263 : vector<4x1xf32>
    %265 = vector.broadcast %264 : vector<4x1xf32> to vector<4x4xf32>
    %266 = arith.subf %258, %265 : vector<4x4xf32>
    %cst_60 = arith.constant 0.000000e+00 : f32
    %267 = vector.broadcast %cst_60 : f32 to vector<4x4xf32>
    %268 = arith.select %212, %266, %267 : vector<4x4xi1>, vector<4x4xf32>
    %cst_61 = arith.constant dense<0.000000e+00> : vector<4xf32>
    %269 = vector.multi_reduction <add>, %268, %cst_61 [0] : vector<4x4xf32> to vector<4xf32>
    %270 = vector.shape_cast %269 : vector<4xf32> to vector<1x4xf32>
    %cst_62 = arith.constant dense<0.000000e+00> : vector<1xf32>
    %271 = vector.multi_reduction <add>, %270, %cst_62 [1] : vector<1x4xf32> to vector<1xf32>
    %272 = vector.shape_cast %271 : vector<1xf32> to vector<1x1xf32>
    %273 = arith.addf %237, %272 : vector<1x1xf32>
    %cst_63 = arith.constant dense<0xFF800000> : vector<4xf32>
    %274 = vector.multi_reduction <maximumf>, %266, %cst_63 [0] : vector<4x4xf32> to vector<4xf32>
    %275 = vector.shape_cast %274 : vector<4xf32> to vector<1x4xf32>
    %276 = vector.broadcast %275 : vector<1x4xf32> to vector<4x4xf32>
    %277 = arith.cmpf oge, %266, %276 : vector<4x4xf32>
    %c4_i32_64 = arith.constant 4 : i32
    %278 = vector.broadcast %c4_i32_64 : i32 to vector<4x4xi32>
    %279 = arith.select %277, %210, %278 : vector<4x4xi1>, vector<4x4xi32>
    %cst_65 = arith.constant dense<2147483647> : vector<4xi32>
    %280 = vector.multi_reduction <minsi>, %279, %cst_65 [0] : vector<4x4xi32> to vector<4xi32>
    %281 = vector.shape_cast %280 : vector<4xi32> to vector<1x4xi32>
    %282 = arith.cmpi eq, %281, %213 : vector<1x4xi32>
    %283 = arith.extui %282 : vector<1x4xi1> to vector<1x4xi32>
    %284 = arith.sitofp %283 : vector<1x4xi32> to vector<1x4xf32>
    %cst_66 = arith.constant dense<0.000000e+00> : vector<1xf32>
    %285 = vector.multi_reduction <add>, %284, %cst_66 [1] : vector<1x4xf32> to vector<1xf32>
    %286 = vector.shape_cast %285 : vector<1xf32> to vector<1x1xf32>
    %287 = arith.addf %251, %286 : vector<1x1xf32>
    %c0_67 = arith.constant 0 : index
    %c0_68 = arith.constant 0 : index
    %288 = vector.load %arg10[%c0_67, %c0_68] : memref<4x32xf32, #tpu.memory_space<vmem>>, vector<4x32xf32>
    tpu.vector_store %arg10[%c0_67, %c0_68], %203 {strides = array<i32>} : memref<4x32xf32, #tpu.memory_space<vmem>>, vector<4x32xf32>,
    %c0_69 = arith.constant 0 : index
    %c0_70 = arith.constant 0 : index
    %289 = vector.load %arg11[%c0_69, %c0_70] : memref<1x2xf32, #tpu.memory_space<vmem>>, vector<1x1xf32>
    tpu.vector_store %arg11[%c0_69, %c0_70], %273 {strides = array<i32>} : memref<1x2xf32, #tpu.memory_space<vmem>>, vector<1x1xf32>,
    %c0_71 = arith.constant 0 : index
    %c1 = arith.constant 1 : index
    %290 = vector.load %arg11[%c0_71, %c1] : memref<1x2xf32, #tpu.memory_space<vmem>>, vector<1x1xf32>
    tpu.vector_store %arg11[%c0_71, %c1], %287 {strides = array<i32>} : memref<1x2xf32, #tpu.memory_space<vmem>>, vector<1x1xf32>,
    return
  }
}

</mosaic_0001>

<bundles_post_ra>
// kernel: cpc_forward.1
= control target key start
LH: loop header
LB: loop body
LE: loop exit
PB: predicated region body
PF: predicated region fallthrough
CT: control target
= control target key end

     0   :  { %vm83_vm0 = vcmask 392192   ;;  %v1386_v8 = vmov 0.0   ;;  %vm1387_vm1 = vmmov 0   ;;  %vm168_vm2 = vcmask 261120   ;;  %s1388_s18 = smov 64   ;;  %s1676_s1 = inlined_call_operand.vmem [shape: bf16[48,32], index: 1, kind: input, shape index: {}]   ;;  %s1677_s0 = inlined_call_operand.vmem [shape: bf16[32,48], index: 0, kind: input, shape index: {}]   ;;  %s1678_s4 = inlined_call_operand.vmem [shape: bf16[32,96], index: 4, kind: input, shape index: {}]   ;;  %s1679_s5 = inlined_call_operand.vmem [shape: bf16[32,96], index: 5, kind: input, shape index: {}]   ;;  %s1680_s2 = inlined_call_operand.vmem [shape: f32[1,32], index: 2, kind: input, shape index: {}]   ;;  %s1681_s3 = inlined_call_operand.vmem [shape: f32[4,32], index: 3, kind: input, shape index: {}, may-alias: {3,10}]   ;;  %s1682_s6 = inlined_call_operand.vmem [shape: f32[1,96], index: 6, kind: input, shape index: {}]   ;;  %s1683_s7 = inlined_call_operand.vmem [shape: f32[1,96], index: 7, kind: input, shape index: {}]   ;;  %s1684_s8 = inlined_call_operand.vmem [shape: bf16[32,64], index: 8, kind: input, shape index: {}]   ;;  %s1685_s9 = inlined_call_operand.vmem [shape: f32[64,1], index: 9, kind: input, shape index: {}]   ;;  %s1686_s11 = inlined_call_operand.vmem [shape: f32[1,2], index: 11, kind: output, shape index: {1}]   ;;  %s1687_s10 = inlined_call_operand.vmem [shape: f32[4,32], index: 10, kind: output, shape index: {0}, may-alias: {3,10}]  }
   0x1   :  { %v1331_v0 = vld [vmem:[%s1676_s1 + $0x10] sm:$0xff]   ;;  %v1332_v1 = vld [vmem:[%s1676_s1 + $0x8] sm:$0xff]   ;;  %v1334_v2 = vld [vmem:[%s1677_s0] sm:$0xff]   ;;  %vm952_vm3 = vcmask 27648   ;;  %vm973_vm5 = vcmask 31744  }
   0x2   :  { %1225 = vmatprep.subr.bf16.mxu0 %v1331_v0  ;;  %v1333_v3 = vld [vmem:[%s1676_s1] sm:$0xff]   ;;  %1231 = vmatprep.mubr.msk.bf16.mxu0 %vm83_vm0, %v1334_v2  ;;  %v1335_v4 = vld [vmem:[%s1677_s0 + $0x8] sm:$0xff]  }
   0x3   :  { %1226 = vmatpush3.bf16.msra.mxu0 %v1331_v0  ;;  %v1336_v5 = vld [vmem:[%s1678_s4 + $0x8] sm:$0xff]   ;;  %v1337_v6 = vld [vmem:[%s1678_s4] sm:$0xff]  }
   0x4   :  { %1227 = vmatprep.subr.bf16.mxu0 %v1332_v1  ;;  %1235 = vmatprep.subr.bf16.mxu1 %v1336_v5  ;;  %v1476_v7 = vld [vmem:[%s1679_s5 + $0x8] sm:$0xff]   ;;  %v1485_v9 = vld [vmem:[%s1679_s5] sm:$0xff]  }
   0x5   :  { %1236 = vmatpush3.bf16.msra.mxu1 %v1336_v5  ;;  %v1145_v11 = vld [vmem:[%s1680_s2] ss:$0 sm:$0xff] }
   0x6   :  { %1237 = vmatprep.subr.bf16.mxu1 %v1337_v6  ;;  %v228_v24 = vld [vmem:[%s1681_s3] sm:$0xf] }
   0x7   :  { %1228 = vmatpush3.bf16.msra.mxu0 %v1332_v1  ;;  %v229_v25 = vpack.c.bf16 %v228_v24, %v228_v24  ;;  %v1153_v26 = vld [vmem:[%s1682_s6] ss:$0 sm:$0xff]  ;;  %s1389_s6 = smov 96  }
   0x8   :  { %1229 = vmatprep.subr.bf16.mxu0 %v1333_v3  ;;  %v1522_v32 = vld [vmem:[%s1683_s7] ss:$0 sm:$0xff]  ;;  %s1390_s7 = smov 32  }
   0x9   :  { %1238 = vmatpush3.bf16.msra.mxu1 %v1337_v6 }
   0xa   :  { %1243 = vmatprep.subr.bf16.mxu1 %v1386_v8 }
   0xb   :  { %1230 = vmatpush3.bf16.msra.mxu0 %v1333_v3 }
   0xc   :  { %1251 = vmatprep.subr.bf16.mxu0 %v1386_v8 }
   0xe   :  { %1232 = vmatmul.mubr.msk.bf16.vlgmr.msra.gmra.mxu0 %vm83_vm0, %v1335_v4  ;;  %vm1133_vm0 = vcmask 0  }
   0xf   :  { %1252 = vmatpush3.bf16.msra.mxu0 %v1476_v7  ;;  %1255 = vmatprep.mubr.msk.bf16.mxu0 %vm1387_vm1, %v1386_v8 }
  0x10   :  { %1253 = vmatprep.subr.bf16.mxu0 %v1386_v8 }
  0x13   :  { %1254 = vmatpush3.bf16.msra.mxu0 %v1485_v9 }
  0x14   :  { %1267 = vmatprep.subr.bf16.mxu0 %v1386_v8 }
  0xce   :  { %v1233_v10 = vpop.f32.mrf.mxu0 }
  0xcf   :  { %v133_v13 = vadd.f32 %v1233_v10, %v1145_v11 }
  0xd0   :  { %v124_v12 = vpop.f32.mrf.mxu0 }
  0xd1   :  { %v125_v15 = vadd.f32 %v1145_v11, %v124_v12  ;;  %v141_v19 = vmax.f32 %v133_v13, 0.0 }
  0xd2   :  { %v1234_v14 = vpop.f32.mrf.mxu0 }
  0xd3   :  { %v1494_v16 = vadd.f32 %v1234_v14, %v1145_v11  ;;  %v139_v20 = vmax.f32 %v125_v15, 0.0  ;;  %v144_v23 = vpack.c.bf16 %v141_v19, %v141_v19 }
  0xd4   :  { %v127_v17 = vpop.f32.mrf.mxu0 }
  0xd5   :  { %v128_v18 = vadd.f32 %v1145_v11, %v127_v17 }
  0xd7   :  { %v140_v21 = vmax.f32 %v128_v18, 0.0 }
  0xd9   :  { %v143_v22 = vpack.c.bf16 %v140_v21, %v139_v20 }
  0xdb   :  { %1239 = vmatprep.mubr.msk.bf16.mxu1 %vm168_vm2, %v143_v22 }
  0xdc   :  { %1240 = vmatmul.mubr.msk.bf16.vlgmr.msra.gmra.mxu1 %vm168_vm2, %v144_v23 }
  0xdd   :  { %1244 = vmatpush3.bf16.msra.mxu1 %v1476_v7  ;;  %1247 = vmatprep.mubr.msk.bf16.mxu1 %vm1387_vm1, %v1386_v8 }
  0xde   :  { %1245 = vmatprep.subr.bf16.mxu1 %v1386_v8 }
  0xe1   :  { %1246 = vmatpush3.bf16.msra.mxu1 %v1485_v9 }
  0xe2   :  { %1259 = vmatprep.subr.bf16.mxu1 %v1386_v8 }
  0xe4   :  { %1248 = vmatmul.mubr.msk.bf16.vlgmr.msra.gmra.mxu1 %vm168_vm2, %v229_v25 }
  0xe5   :  { %1260 = vmatpush3.bf16.msra.mxu1 %v1476_v7  ;;  %1263 = vmatprep.mubr.msk.bf16.mxu1 %vm1387_vm1, %v1386_v8 }
  0xe6   :  { %1261 = vmatprep.subr.bf16.mxu1 %v1386_v8 }
  0xe9   :  { %1262 = vmatpush3.bf16.msra.mxu1 %v1485_v9 }
  0xea   :  { %1275 = vmatprep.subr.bf16.mxu1 %v1386_v8 }
 0x19c   :  { %v1241_v27 = vpop.f32.mrf.mxu1 }
 0x19d   :  { %v1517_v28 = vadd.f32 %v1241_v27, %v1153_v26 }
 0x19e   :  { %v209_v29 = vpop.f32.mrf.mxu1 }
 0x19f   :  { %v210_v39 = vadd.f32 %v1153_v26, %v209_v29 }
 0x1a0   :  { %v1242_v30 = vpop.f32.mrf.mxu1 }
 0x1a2   :  { %v212_v31 = vpop.f32.mrf.mxu1 }
 0x1a3   :  { %v1524_v33 = vadd.f32 %v1153_v26, %v212_v31 }
 0x1a4   :  { %v285_v34 = vpop.f32.mrf.mxu1 }
 0x1a5   :  { %v286_v35 = vadd.f32 %v1522_v32, %v285_v34 }
 0x1a6   :  { %v1249_v36 = vpop.f32.mrf.mxu1 }
 0x1a7   :  { %299 = vrot.lane.b32.xlu0 %v286_v35, %s1388_s18  ;;  %v291_v40 = vadd.f32 %v286_v35, %v210_v39 }
 0x1a8   :  { %v288_v37 = vpop.f32.mrf.mxu1 }
 0x1a9   :  { %v1162_v41 = vmul.f32 -1.442695, %v291_v40 }
 0x1aa   :  { %v1250_v38 = vpop.f32.mrf.mxu1 }
 0x1ab   :  { %1342 = vpow2.f32 %v1162_v41 }
 0x1b8   :  { %v1343_v42 = vpop.eup %1342 }
 0x1b9   :  { %v295_v43 = vadd.f32 1.0, %v1343_v42 }
 0x1bb   :  { %1344 = vrcp.f32 %v295_v43 }
 0x1c8   :  { %v1345_v44 = vpop.eup %1344 }
 0x1c9   :  { %v309_v51 = vsub.f32 1.0, %v1345_v44 }
 0x219   :  { %v300_v45 = vpop.permute.xlu0 %299 }
 0x21a   :  { %v302_v46 = vmul.f32 %v1345_v44, %v300_v45 }
 0x21c   :  { %304 = vrot.lane.b32.xlu0 %v302_v46, %s1388_s18 }
 0x28e   :  { %v305_v47 = vpop.permute.xlu0 %304 }
 0x28f   :  { %v307_v48 = vadd.f32 %v305_v47, %v210_v39 }
 0x291   :  { %1346 = vtanh.f32 %v307_v48 }
 0x29e   :  { %v1347_v49 = vpop.eup %1346 }
 0x29f   :  { %311 = vrot.lane.b32.xlu1 %v1347_v49, %s1389_s6 }
 0x2a3   :  { %316 = vrot.lane.b32.xlu1 %v228_v24, %s1390_s7 }
 0x311   :  { %v312_v50 = vpop.permute.xlu1 %311 }
 0x312   :  { %v314_v53 = vmul.f32 %v312_v50, %v309_v51 }
 0x315   :  { %v317_v52 = vpop.permute.xlu1 %316 }
 0x316   :  { %v319_v54 = vmul.f32 %v1345_v44, %v317_v52 }
 0x318   :  { %v320_v55 = vadd.f32 %v319_v54, %v314_v53 }
 0x31a   :  { %v321_v56 = vpack.c.bf16 %v320_v55, %v320_v55  ;;  %v395_v13 = vrot.slane %v320_v55, 4 }
 0x31c   :  { %323 = vrot.lane.b32.xlu0 %v321_v56, %s1389_s6 }
 0x38e   :  { %v324_v57 = vpop.permute.xlu0 %323 }
 0x38f   :  { %1256 = vmatmul.mubr.msk.bf16.vlgmr.msra.gmra.mxu0 %vm168_vm2, %v324_v57 }
 0x390   :  { %1268 = vmatpush3.bf16.msra.mxu0 %v1476_v7  ;;  %1271 = vmatprep.mubr.msk.bf16.mxu0 %vm1387_vm1, %v1386_v8 }
 0x391   :  { %1269 = vmatprep.subr.bf16.mxu0 %v1386_v8 }
 0x394   :  { %1270 = vmatpush3.bf16.msra.mxu0 %v1485_v9 }
 0x395   :  { %1283 = vmatprep.subr.bf16.mxu0 %v1386_v8 }
 0x44f   :  { %v362_v58 = vpop.f32.mrf.mxu0 }
 0x450   :  { %v363_v59 = vadd.f32 %v1522_v32, %v362_v58 }
 0x451   :  { %v1257_v60 = vpop.f32.mrf.mxu0 }
 0x452   :  { %v369_v61 = vrot.slane %v363_v59, 4 }
 0x453   :  { %v365_v62 = vpop.f32.mrf.mxu0 }
 0x454   :  { %378 = vrot.lane.b32.xlu1 %v369_v61, %s1388_s18  ;;  %v371_v0 = vadd.f32 %v369_v61, %v210_v39 }
 0x455   :  { %v1258_v63 = vpop.f32.mrf.mxu0 }
 0x456   :  { %v1164_v1 = vmul.f32 -1.442695, %v371_v0 }
 0x458   :  { %1348 = vpow2.f32 %v1164_v1 }
 0x465   :  { %v1349_v2 = vpop.eup %1348 }
 0x466   :  { %v375_v3 = vadd.f32 1.0, %v1349_v2 }
 0x468   :  { %1350 = vrcp.f32 %v375_v3 }
 0x475   :  { %v1351_v4 = vpop.eup %1350 }
 0x476   :  { %v388_v14 = vsub.f32 1.0, %v1351_v4  ;;  %v397_v17 = vmul.f32 %v1351_v4, %v395_v13 }
 0x4c6   :  { %v379_v5 = vpop.permute.xlu1 %378 }
 0x4c7   :  { %v381_v6 = vmul.f32 %v1351_v4, %v379_v5 }
 0x4c9   :  { %383 = vrot.lane.b32.xlu0 %v381_v6, %s1388_s18 }
 0x53b   :  { %v384_v10 = vpop.permute.xlu0 %383 }
 0x53c   :  { %v386_v11 = vadd.f32 %v384_v10, %v210_v39 }
 0x53e   :  { %1352 = vtanh.f32 %v386_v11 }
 0x54b   :  { %v1353_v12 = vpop.eup %1352 }
 0x54c   :  { %390 = vrot.lane.b32.xlu1 %v1353_v12, %s1389_s6 }
 0x5be   :  { %v391_v15 = vpop.permute.xlu1 %390 }
 0x5bf   :  { %v393_v18 = vmul.f32 %v391_v15, %v388_v14 }
 0x5c1   :  { %v398_v19 = vadd.f32 %v397_v17, %v393_v18 }
 0x5c3   :  { %v399_v20 = vpack.c.bf16 %v398_v19, %v398_v19  ;;  %v472_v41 = vrot.slane %v398_v19, 4 }
 0x5c5   :  { %v401_v21 = vrot.slane %v399_v20, 2 }
 0x5c7   :  { %402 = vrot.lane.b32.xlu0 %v401_v21, %s1389_s6 }
 0x639   :  { %v403_v22 = vpop.permute.xlu0 %402 }
 0x63a   :  { %1264 = vmatmul.mubr.msk.bf16.vlgmr.msra.gmra.mxu1 %vm168_vm2, %v403_v22 }
 0x63b   :  { %1276 = vmatpush3.bf16.msra.mxu1 %v1476_v7  ;;  %1279 = vmatprep.mubr.msk.bf16.mxu1 %vm1387_vm1, %v1386_v8 }
 0x63c   :  { %1277 = vmatprep.subr.bf16.mxu1 %v1386_v8 }
 0x63f   :  { %1278 = vmatpush3.bf16.msra.mxu1 %v1485_v9 }
 0x6fa   :  { %v441_v23 = vpop.f32.mrf.mxu1 }
 0x6fb   :  { %v442_v24 = vadd.f32 %v1522_v32, %v441_v23 }
 0x6fc   :  { %v1265_v25 = vpop.f32.mrf.mxu1 }
 0x6fd   :  { %455 = vrot.lane.b32.xlu1 %v442_v24, %s1388_s18  ;;  %v447_v29 = vadd.f32 %v442_v24, %v1524_v33 }
 0x6fe   :  { %v444_v26 = vpop.f32.mrf.mxu1 }
 0x6ff   :  { %v1166_v30 = vmul.f32 -1.442695, %v447_v29 }
 0x700   :  { %v1266_v27 = vpop.f32.mrf.mxu1 }
 0x701   :  { %1354 = vpow2.f32 %v1166_v30 }
 0x70e   :  { %v1355_v31 = vpop.eup %1354 }
 0x70f   :  { %v451_v34 = vadd.f32 1.0, %v1355_v31 }
 0x711   :  { %1356 = vrcp.f32 %v451_v34 }
 0x71e   :  { %v1357_v35 = vpop.eup %1356 }
 0x71f   :  { %v465_v42 = vsub.f32 1.0, %v1357_v35  ;;  %v474_v44 = vmul.f32 %v1357_v35, %v472_v41 }
 0x76f   :  { %v456_v36 = vpop.permute.xlu1 %455 }
 0x770   :  { %v458_v37 = vmul.f32 %v1357_v35, %v456_v36 }
 0x772   :  { %460 = vrot.lane.b32.xlu0 %v458_v37, %s1388_s18 }
 0x7e4   :  { %v461_v38 = vpop.permute.xlu0 %460 }
 0x7e5   :  { %v463_v39 = vadd.f32 %v461_v38, %v1524_v33 }
 0x7e7   :  { %1358 = vtanh.f32 %v463_v39 }
 0x7f4   :  { %v1359_v40 = vpop.eup %1358 }
 0x7f5   :  { %467 = vrot.lane.b32.xlu1 %v1359_v40, %s1389_s6 }
 0x867   :  { %v468_v43 = vpop.permute.xlu1 %467 }
 0x868   :  { %v470_v45 = vmul.f32 %v468_v43, %v465_v42 }
 0x86a   :  { %v475_v46 = vadd.f32 %v474_v44, %v470_v45 }
 0x86c   :  { %v476_v47 = vpack.c.bf16 %v475_v46, %v475_v46  ;;  %v550_v63 = vrot.slane %v475_v46, 4 }
 0x86e   :  { %478 = vrot.lane.b32.xlu0 %v476_v47, %s1389_s6 }
 0x8e0   :  { %v479_v48 = vpop.permute.xlu0 %478 }
 0x8e1   :  { %1272 = vmatmul.mubr.msk.bf16.vlgmr.msra.gmra.mxu0 %vm168_vm2, %v479_v48 }
 0x8e2   :  { %1284 = vmatpush3.bf16.msra.mxu0 %v1476_v7  ;;  %1287 = vmatprep.mubr.msk.bf16.mxu0 %vm1387_vm1, %v1386_v8 }
 0x8e3   :  { %1285 = vmatprep.subr.bf16.mxu0 %v1386_v8 }
 0x8e6   :  { %1286 = vmatpush3.bf16.msra.mxu0 %v1485_v9 }
 0x8e7   :  { %1301 = vmatprep.subr.mxu0 %v1386_v8 }
 0x9a1   :  { %v517_v49 = vpop.f32.mrf.mxu0 }
 0x9a2   :  { %v518_v50 = vadd.f32 %v1522_v32, %v517_v49 }
 0x9a3   :  { %v1273_v51 = vpop.f32.mrf.mxu0 }
 0x9a4   :  { %v524_v52 = vrot.slane %v518_v50, 4 }
 0x9a5   :  { %v520_v53 = vpop.f32.mrf.mxu0 }
 0x9a6   :  { %533 = vrot.lane.b32.xlu1 %v524_v52, %s1388_s18  ;;  %v526_v7 = vadd.f32 %v524_v52, %v1524_v33  ;;  %v1340_v52 = vld [vmem:[%s1684_s8] sm:$0xff]   ;;  %v1341_v53 = vld [vmem:[%s1684_s8 + $0x8] sm:$0xff]  }
 0x9a7   :  { %v1274_v54 = vpop.f32.mrf.mxu0 }
 0x9a8   :  { %v1168_v55 = vmul.f32 -1.442695, %v526_v7 }
 0x9aa   :  { %1360 = vpow2.f32 %v1168_v55 }
 0x9b7   :  { %v1361_v56 = vpop.eup %1360 }
 0x9b8   :  { %v530_v57 = vadd.f32 1.0, %v1361_v56 }
 0x9ba   :  { %1362 = vrcp.f32 %v530_v57 }
 0x9c7   :  { %v1363_v58 = vpop.eup %1362 }
 0x9c8   :  { %v543_v0 = vsub.f32 1.0, %v1363_v58  ;;  %v552_v2 = vmul.f32 %v1363_v58, %v550_v63  ;;  %v715_v63 = vld [vmem:[%s1685_s9 + $0x8] sm:$0xff] }
 0xa18   :  { %v534_v9 = vpop.permute.xlu1 %533 }
 0xa19   :  { %v536_v59 = vmul.f32 %v1363_v58, %v534_v9 }
 0xa1b   :  { %538 = vrot.lane.b32.xlu0 %v536_v59, %s1388_s18  ;;  %v1391_v59 = vmov 0  }
 0xa1c   :  { %1330 = vset.pattern.permute.xlu0 %v1391_v59 }
 0xa8d   :  { %v539_v60 = vpop.permute.xlu0 %538 }
 0xa8e   :  { %v541_v61 = vadd.f32 %v539_v60, %v1524_v33  ;;  %v717_v60 = vld [vmem:[%s1685_s9 + $0x18] sm:$0xff] }
 0xa90   :  { %1364 = vtanh.f32 %v541_v61  ;;  %v716_v61 = vld [vmem:[%s1685_s9 + $0x10] sm:$0xff] }
 0xa9d   :  { %v1365_v62 = vpop.eup %1364 }
 0xa9e   :  { %545 = vrot.lane.b32.xlu1 %v1365_v62, %s1389_s6 }
 0xb10   :  { %v546_v1 = vpop.permute.xlu1 %545 }
 0xb11   :  { %v548_v3 = vmul.f32 %v546_v1, %v543_v0  ;;  %v714_v0 = vld [vmem:[%s1685_s9] sm:$0xff]  ;;  %v721_v1 = vld [vmem:[%s1685_s9 + $0x38] sm:$0xff] }
 0xb13   :  { %v553_v4 = vadd.f32 %v552_v2, %v548_v3  ;;  %v720_v2 = vld [vmem:[%s1685_s9 + $0x30] sm:$0xff]  ;;  %v719_v3 = vld [vmem:[%s1685_s9 + $0x28] sm:$0xff] }
 0xb15   :  { %v554_v5 = vpack.c.bf16 %v553_v4, %v553_v4  ;;  %v627_v26 = vrot.slane %v553_v4, 4  ;;  %v718_v4 = vld [vmem:[%s1685_s9 + $0x20] sm:$0xff] }
 0xb17   :  { %v556_v6 = vrot.slane %v554_v5, 2 }
 0xb19   :  { %557 = vrot.lane.b32.xlu0 %v556_v6, %s1389_s6 }
 0xb8b   :  { %v558_v10 = vpop.permute.xlu0 %557 }
 0xb8c   :  { %1280 = vmatmul.mubr.msk.bf16.vlgmr.msra.gmra.mxu1 %vm168_vm2, %v558_v10 }
 0xc4c   :  { %v596_v11 = vpop.f32.mrf.mxu1 }
 0xc4d   :  { %v597_v33 = vadd.f32 %v1522_v32, %v596_v11 }
 0xc4e   :  { %v1281_v12 = vpop.f32.mrf.mxu1 }
 0xc4f   :  { %610 = vrot.lane.b32.xlu1 %v597_v33, %s1388_s18  ;;  %v602_v15 = vadd.f32 %v597_v33, %v1517_v28 }
 0xc50   :  { %v599_v13 = vpop.f32.mrf.mxu1 }
 0xc51   :  { %v1170_v17 = vmul.f32 -1.442695, %v602_v15 }
 0xc52   :  { %v1282_v14 = vpop.f32.mrf.mxu1 }
 0xc53   :  { %1366 = vpow2.f32 %v1170_v17 }
 0xc60   :  { %v1367_v18 = vpop.eup %1366 }
 0xc61   :  { %v606_v19 = vadd.f32 1.0, %v1367_v18 }
 0xc63   :  { %1368 = vrcp.f32 %v606_v19 }
 0xc70   :  { %v1369_v20 = vpop.eup %1368 }
 0xc71   :  { %v620_v27 = vsub.f32 1.0, %v1369_v20  ;;  %v629_v30 = vmul.f32 %v1369_v20, %v627_v26 }
 0xcc1   :  { %v611_v21 = vpop.permute.xlu1 %610 }
 0xcc2   :  { %v613_v22 = vmul.f32 %v1369_v20, %v611_v21 }
 0xcc4   :  { %615 = vrot.lane.b32.xlu0 %v613_v22, %s1388_s18 }
 0xd36   :  { %v616_v23 = vpop.permute.xlu0 %615 }
 0xd37   :  { %v618_v24 = vadd.f32 %v616_v23, %v1517_v28 }
 0xd39   :  { %1370 = vtanh.f32 %v618_v24 }
 0xd46   :  { %v1371_v25 = vpop.eup %1370 }
 0xd47   :  { %622 = vrot.lane.b32.xlu1 %v1371_v25, %s1389_s6 }
 0xdb9   :  { %v623_v29 = vpop.permute.xlu1 %622 }
 0xdba   :  { %v625_v31 = vmul.f32 %v623_v29, %v620_v27 }
 0xdbc   :  { %v630_v34 = vadd.f32 %v629_v30, %v625_v31  ;;  %v142_v30 = vmax.f32 %v1494_v16, 0.0 }
 0xdbe   :  { %v631_v35 = vpack.c.bf16 %v630_v34, %v630_v34  ;;  %v705_v54 = vrot.slane %v630_v34, 4 }
 0xdc0   :  { %633 = vrot.lane.b32.xlu0 %v631_v35, %s1389_s6 }
 0xe32   :  { %v634_v36 = vpop.permute.xlu0 %633 }
 0xe33   :  { %1288 = vmatmul.mubr.msk.bf16.vlgmr.msra.gmra.mxu0 %vm168_vm2, %v634_v36 }
 0xe34   :  { %1309 = vmatprep.mubr.msk.f32.mxu0 %vm1387_vm1, %v1386_v8 }
 0xef3   :  { %v672_v37 = vpop.f32.mrf.mxu0 }
 0xef4   :  { %v673_v38 = vadd.f32 %v1522_v32, %v672_v37 }
 0xef5   :  { %v1289_v39 = vpop.f32.mrf.mxu0 }
 0xef6   :  { %v679_v40 = vrot.slane %v673_v38, 4 }
 0xef7   :  { %v675_v41 = vpop.f32.mrf.mxu0 }
 0xef8   :  { %688 = vrot.lane.b32.xlu1 %v679_v40, %s1388_s18  ;;  %v681_v43 = vadd.f32 %v679_v40, %v1517_v28  ;;  %v1004_v40 = vrot.slane %v142_v30, 4 }
 0xef9   :  { %v1290_v42 = vpop.f32.mrf.mxu0 }
 0xefa   :  { %v1172_v44 = vmul.f32 -1.442695, %v681_v43 }
 0xefc   :  { %1372 = vpow2.f32 %v1172_v44 }
 0xf09   :  { %v1373_v45 = vpop.eup %1372 }
 0xf0a   :  { %v685_v46 = vadd.f32 1.0, %v1373_v45 }
 0xf0c   :  { %1374 = vrcp.f32 %v685_v46 }
 0xf19   :  { %v1375_v47 = vpop.eup %1374 }
 0xf1a   :  { %v698_v7 = vsub.f32 1.0, %v1375_v47  ;;  %v707_v56 = vmul.f32 %v1375_v47, %v705_v54 }
 0xf6a   :  { %v689_v48 = vpop.permute.xlu1 %688 }
 0xf6b   :  { %v691_v49 = vmul.f32 %v1375_v47, %v689_v48 }
 0xf6d   :  { %693 = vrot.lane.b32.xlu0 %v691_v49, %s1388_s18 }
 0xfdf   :  { %v694_v50 = vpop.permute.xlu0 %693 }
 0xfe0   :  { %v696_v32 = vadd.f32 %v694_v50, %v1517_v28 }
 0xfe2   :  { %1376 = vtanh.f32 %v696_v32 }
 0xfef   :  { %v1377_v51 = vpop.eup %1376 }
 0xff0   :  { %700 = vrot.lane.b32.xlu1 %v1377_v51, %s1389_s6 }
0x1013   :  { %774 = vxpose.xlu1.c.b16.start [1/2] (short) (narrow) %v1340_v52, 64 }
0x1017   :  { %775 = vxpose.xlu1.c.b16.end [2/2] (short) (narrow) %v1341_v53, 64 }
0x1062   :  { %v701_v55 = vpop.permute.xlu1 %700 }
0x1063   :  { %v703_v57 = vmul.f32 %v701_v55, %v698_v7 }
0x1065   :  { %v1593_v28 = vadd.f32 %v707_v56, %v703_v57  ;;  %v874_v57 = vlaneseq }
0x1067   :  { %v713_v58 = vpack.c.bf16 %v1593_v28, %v1593_v28 }
0x1069   :  { %v791_v9 = vrot.slane %v713_v58, 2  ;;  %v875_v58 = vshrl.u32 %v874_v57, 7 }
0x106b   :  { %792 = vrot.lane.b32.xlu0 %v791_v9, %s1389_s6  ;;  %v1644_v9 = vand.u32 127, %v874_v57 }
0x106d   :  { %vm878_vm4 = vcmp.eq.s32.totalorder %v875_v58, %v1644_v9 }
0x106f   :  { %739 = vperm.xlu0 %1330, %v717_v60  }
0x1073   :  { %734 = vperm.xlu0 %1330, %v716_v61  }
0x1075   :  { %v782_v62 = vpop.trf.xlu1 }
0x1076   :  { %1293 = vmatprep.mubr.msk.bf16.mxu1 %vm168_vm2, %v782_v62 }
0x1077   :  { %729 = vperm.xlu0 %1330, %v715_v63  }
0x1079   :  { %v783_v10 = vpop.trf.xlu1 }
0x107b   :  { %724 = vperm.xlu0 %1330, %v714_v0  }
0x107d   :  { %v784_v11 = vpop.trf.xlu1 }
0x107f   :  { %759 = vperm.xlu0 %1330, %v721_v1  }
0x1081   :  { %v785_v33 = vpop.trf.xlu1 }
0x1083   :  { %754 = vperm.xlu0 %1330, %v720_v2  }
0x1087   :  { %749 = vperm.xlu0 %1330, %v719_v3  }
0x108b   :  { %744 = vperm.xlu0 %1330, %v718_v4  }
0x10dd   :  { %v793_v5 = vpop.permute.xlu0 %792 }
0x10de   :  { %v807_v6 = vsel %vm168_vm2, %v793_v5, 0  ;;  %1323 = vmatprep.subr.msk.bf16.mxu1 %vm168_vm2, %v793_v5 }
0x10df   :  { %1292 = vmatpush3.bf16.xpose.msra.mxu1 %v807_v6 }
0x10e6   :  { %1294 = vmatmul.mubr.msk.bf16.vlgmr.msra.gmra.mxu1 %vm168_vm2, %v783_v10 }
0x10e7   :  { %1297 = vmatprep.mubr.msk.bf16.mxu1 %vm168_vm2, %v784_v11 }
0x10ea   :  { %v740_v12 = vpop.permute.xlu0 %739 }
0x10ee   :  { %1298 = vmatmul.mubr.msk.bf16.gmra.mxu1 %vm168_vm2, %v785_v33  ;;  %v735_v13 = vpop.permute.xlu0 %734 }
0x10f2   :  { %v730_v14 = vpop.permute.xlu0 %729 }
0x10f6   :  { %v725_v15 = vpop.permute.xlu0 %724 }
0x10fa   :  { %v760_v17 = vpop.permute.xlu0 %759 }
0x10fe   :  { %v755_v22 = vpop.permute.xlu0 %754 }
0x1102   :  { %v750_v31 = vpop.permute.xlu0 %749 }
0x1106   :  { %v745_v16 = vpop.permute.xlu0 %744 }
0x11a6   :  { %v1295_v18 = vpop.f32.mrf.mxu1 }
0x11a7   :  { %v852_v24 = vadd.f32 %v1295_v18, %v735_v13 }
0x11a8   :  { %v843_v19 = vpop.f32.mrf.mxu1 }
0x11a9   :  { %v844_v29 = vadd.f32 %v843_v19, %v725_v15 }
0x11aa   :  { %v1296_v20 = vpop.f32.mrf.mxu1 }
0x11ab   :  { %v855_v21 = vadd.f32 %v1296_v20, %v740_v12 }
0x11ac   :  { %v846_v23 = vpop.f32.mrf.mxu1 }
0x11ad   :  { %1302 = vmatpush3.msra.mxu0 %v855_v21  ;;  %v847_v26 = vadd.f32 %v846_v23, %v730_v14 }
0x11ae   :  { %v1299_v25 = vpop.f32.mrf.mxu1  ;;  %1303 = vmatprep.subr.mxu0 %v1386_v8 }
0x11af   :  { %1304 = vmatpush3.msra.mxu0 %v852_v24  ;;  %v868_v37 = vadd.f32 %v1299_v25, %v755_v22 }
0x11b0   :  { %v859_v27 = vpop.f32.mrf.mxu1  ;;  %1305 = vmatprep.subr.mxu0 %v1386_v8 }
0x11b1   :  { %1306 = vmatpush3.msra.mxu0 %v847_v26  ;;  %v860_v39 = vadd.f32 %v859_v27, %v745_v16 }
0x11b2   :  { %v1300_v34 = vpop.f32.mrf.mxu1  ;;  %1307 = vmatprep.subr.mxu0 %v1386_v8 }
0x11b3   :  { %v871_v35 = vadd.f32 %v1300_v34, %v760_v17  ;;  %1308 = vmatpush3.msra.mxu0 %v844_v29 }
0x11b4   :  { %v862_v36 = vpop.f32.mrf.mxu1  ;;  %1310 = vmatmul.mubr.msk.f32.vlgmr.msra.gmra.mxu0 %vm168_vm2, %v142_v30  ;;  %1312 = vmatprep.subr.mxu0 %v1386_v8 }
0x11b5   :  { %1313 = vmatpush3.msra.mxu0 %v871_v35  ;;  %1320 = vmatprep.mubr.msk.f32.mxu0 %vm1387_vm1, %v1386_v8  ;;  %v863_v38 = vadd.f32 %v862_v36, %v750_v31  ;;  %vm1131_vm1 = vcmask 261124  }
0x11b6   :  { %1314 = vmatprep.subr.mxu0 %v1386_v8 }
0x11b7   :  { %1315 = vmatpush3.msra.mxu0 %v868_v37 }
0x11b8   :  { %1316 = vmatprep.subr.mxu0 %v1386_v8 }
0x11b9   :  { %1317 = vmatpush3.msra.mxu0 %v863_v38 }
0x11ba   :  { %1318 = vmatprep.subr.mxu0 %v1386_v8 }
0x11bb   :  { %1319 = vmatpush3.msra.mxu0 %v860_v39 }
0x11bc   :  { %1321 = vmatmul.mubr.msk.f32.vlgmr.msra.gmra.mxu0 %vm168_vm2, %v1004_v40  ;;  %vm1135_vm2 = vcmask 8200  }
0x1274   :  { %v948_v41 = vpop.f32.mrf.mxu0 }
0x1275   :  { %v953_v42 = vsel %vm952_vm3, %v948_v41, -inf }
0x1276   :  { %954 = vmax.xlane.f32.xlu1 %v953_v42  ;;  %v1311_v43 = vpop.f32.mrf.mxu0 }
0x127c   :  { %v1073_v44 = vpop.f32.mrf.mxu0 }
0x127d   :  { %v1077_v45 = vsel %vm952_vm3, %v1073_v44, -inf }
0x127e   :  { %1078 = vmax.xlane.f32.xlu0 %v1077_v45  ;;  %v1322_v46 = vpop.f32.mrf.mxu0 }
0x12ff   :  { %v955_v47 = vpop.xlane.xlu1 %954 }
0x1300   :  { %v956_v48 = vsub.f32 %v948_v41, %v955_v47 }
0x1302   :  { %v957_v49 = vmul.f32 1.442695, %v956_v48 }
0x1304   :  { %1378 = vpow2.f32 %v957_v49 }
0x1307   :  { %v1079_v50 = vpop.xlane.xlu0 %1078 }
0x1308   :  { %v1080_v32 = vsub.f32 %v1073_v44, %v1079_v50 }
0x130a   :  { %v1081_v51 = vmul.f32 1.442695, %v1080_v32 }
0x130c   :  { %1380 = vpow2.f32 %v1081_v51 }
0x1311   :  { %v1379_v52 = vpop.eup %1378 }
0x1312   :  { %v959_v53 = vsel %vm952_vm3, %v1379_v52, 0.0 }
0x1313   :  { %960 = vadd.xlane.f32.xlu1 %v959_v53 }
0x1319   :  { %v1381_v54 = vpop.eup %1380 }
0x131a   :  { %v1083_v7 = vsel %vm952_vm3, %v1381_v54, 0.0 }
0x131b   :  { %1084 = vadd.xlane.f32.xlu1 %v1083_v7 }
0x139c   :  { %v961_v55 = vpop.xlane.xlu1 %960 }
0x139d   :  { %1382 = vlog2.f32 %v961_v55 }
0x13a4   :  { %v1085_v56 = vpop.xlane.xlu1 %1084 }
0x13a5   :  { %1384 = vlog2.f32 %v1085_v56 }
0x13aa   :  { %v1383_v59 = vpop.eup %1382 }
0x13ab   :  { %v963_v60 = vmul.f32 0.6931472, %v1383_v59 }
0x13ad   :  { %v964_v61 = vsub.f32 %v956_v48, %v963_v60 }
0x13af   :  { %v978_v62 = vsel %vm952_vm3, %v964_v61, -inf  ;;  %v965_v63 = vsel %vm878_vm4, %v964_v61, 0.0 }
0x13b0   :  { %v979_v0 = vrot.slane %v978_v62, 4  ;;  %v966_v1 = vsel %vm952_vm3, %v965_v63, 0.0 }
0x13b1   :  { %v967_v2 = vrot.slane %v966_v1, 4 }
0x13b2   :  { %v1385_v3 = vpop.eup %1384  ;;  %v980_v4 = vmax.f32 %v978_v62, %v979_v0 }
0x13b3   :  { %v1087_v5 = vmul.f32 0.6931472, %v1385_v3  ;;  %v968_v6 = vadd.f32 %v967_v2, %v966_v1 }
0x13b4   :  { %v981_v10 = vrot.slane %v980_v4, 2 }
0x13b5   :  { %v1088_v11 = vsub.f32 %v1080_v32, %v1087_v5  ;;  %v969_v33 = vrot.slane %v968_v6, 2 }
0x13b6   :  { %v982_v12 = vmax.f32 %v980_v4, %v981_v10 }
0x13b7   :  { %v1101_v13 = vsel %vm952_vm3, %v1088_v11, -inf  ;;  %v970_v14 = vadd.f32 %v969_v33, %v968_v6  ;;  %v1089_v15 = vsel %vm878_vm4, %v1088_v11, 0.0 }
0x13b8   :  { %v983_v17 = vrot.slane %v982_v12, 1  ;;  %v1102_v18 = vrot.slane %v1101_v13, 4  ;;  %v1090_v19 = vsel %vm952_vm3, %v1089_v15, 0.0 }
0x13b9   :  { %v971_v20 = vrot.slane %v970_v14, 1  ;;  %v1091_v21 = vrot.slane %v1090_v19, 4 }
0x13ba   :  { %v984_v22 = vmax.f32 %v982_v12, %v983_v17  ;;  %v1103_v23 = vmax.f32 %v1101_v13, %v1102_v18 }
0x13bb   :  { %v972_v24 = vadd.f32 %v971_v20, %v970_v14  ;;  %v1092_v25 = vadd.f32 %v1091_v21, %v1090_v19 }
0x13bc   :  { %vm985_vm6 = vcmp.ge.f32.partialorder %v964_v61, %v984_v22  ;;  %v1104_v26 = vrot.slane %v1103_v23, 2 }
0x13bd   :  { %v974_v27 = vsel %vm973_vm5, %v972_v24, 0.0  ;;  %v1093_v29 = vrot.slane %v1092_v25, 2  ;;  %v986_v30 = vsel %vm985_vm6, %v875_v58, 4 }
0x13be   :  { %v1105_v31 = vmax.f32 %v1103_v23, %v1104_v26  ;;  %975 = vadd.xlane.f32.xlu1 %v974_v27  ;;  %v987_v34 = vsel %vm952_vm3, %v986_v30, 2147483647 }
0x13bf   :  { %v1094_v35 = vadd.f32 %v1093_v29, %v1092_v25  ;;  %v988_v36 = vrot.slane %v987_v34, 4 }
0x13c0   :  { %v1106_v37 = vrot.slane %v1105_v31, 1 }
0x13c1   :  { %v1095_v38 = vrot.slane %v1094_v35, 1  ;;  %vm989_vm7 = vcmp.lt.s32.totalorder %v987_v34, %v988_v36 }
0x13c2   :  { %v1107_v16 = vmax.f32 %v1105_v31, %v1106_v37  ;;  %v990_v39 = vsel %vm989_vm7, %v987_v34, %v988_v36 }
0x13c3   :  { %v1096_v40 = vadd.f32 %v1095_v38, %v1094_v35  ;;  %v991_v41 = vrot.slane %v990_v39, 2 }
0x13c4   :  { %vm1108_vm8 = vcmp.ge.f32.partialorder %v1088_v11, %v1107_v16 }
0x13c5   :  { %v1097_v42 = vsel %vm973_vm5, %v1096_v40, 0.0  ;;  %vm992_vm9 = vcmp.lt.s32.totalorder %v990_v39, %v991_v41  ;;  %v1109_v43 = vsel %vm1108_vm8, %v875_v58, 4 }
0x13c6   :  { %1098 = vadd.xlane.f32.xlu0 %v1097_v42  ;;  %v993_v44 = vsel %vm992_vm9, %v990_v39, %v991_v41  ;;  %v1110_v45 = vsel %vm952_vm3, %v1109_v43, 2147483647 }
0x13c7   :  { %v994_v46 = vrot.slane %v993_v44, 1  ;;  %v1111_v47 = vrot.slane %v1110_v45, 4 }
0x13c9   :  { %vm995_vm10 = vcmp.lt.s32.totalorder %v993_v44, %v994_v46  ;;  %vm1112_vm11 = vcmp.lt.s32.totalorder %v1110_v45, %v1111_v47 }
0x13ca   :  { %v996_v48 = vsel %vm995_vm10, %v993_v44, %v994_v46  ;;  %v1113_v49 = vsel %vm1112_vm11, %v1110_v45, %v1111_v47 }
0x13cb   :  { %vm997_vm12 = vcmp.eq.s32.totalorder %v996_v48, %v1644_v9  ;;  %v1114_v50 = vrot.slane %v1113_v49, 2 }
0x13cc   :  { %v1180_v32 = vsel %vm997_vm12, 1.0, %v1386_v8 }
0x13cd   :  { %v1000_v51 = vsel %vm973_vm5, %v1180_v32, 0.0  ;;  %vm1115_vm13 = vcmp.lt.s32.totalorder %v1113_v49, %v1114_v50 }
0x13ce   :  { %1001 = vadd.xlane.f32.xlu1 %v1000_v51  ;;  %v1116_v52 = vsel %vm1115_vm13, %v1113_v49, %v1114_v50 }
0x13cf   :  { %v1117_v53 = vrot.slane %v1116_v52, 1 }
0x13d1   :  { %vm1118_vm14 = vcmp.lt.s32.totalorder %v1116_v52, %v1117_v53 }
0x13d2   :  { %v1119_v54 = vsel %vm1118_vm14, %v1116_v52, %v1117_v53 }
0x13d3   :  { %vm1120_vm15 = vcmp.eq.s32.totalorder %v1119_v54, %v1644_v9 }
0x13d4   :  { %v1182_v7 = vsel %vm1120_vm15, 1.0, %v1386_v8 }
0x13d5   :  { %v1123_v55 = vsel %vm973_vm5, %v1182_v7, 0.0 }
0x13d6   :  { %1124 = vadd.xlane.f32.xlu0 %v1123_v55 }
0x13df   :  { %1128 = vrot.lane.b32.xlu1 %v1593_v28, %s1389_s6 }
0x1447   :  { %v976_v56 = vpop.xlane.xlu1 %975 }
0x144f   :  { %v1099_v57 = vpop.xlane.xlu0 %1098 }
0x1450   :  { %v1100_v58 = vadd.f32 %v1099_v57, %v976_v56 }
0x1452   :  { %1134 = vst.msk [vmem:[%s1686_s11] sm:$0x1] %vm1133_vm0, %v1100_v58 }
0x1457   :  { %v1002_v59 = vpop.xlane.xlu1 %1001 }
0x145b   :  { %v1129_v60 = vpop.permute.xlu1 %1128 }
0x145c   :  { %1132 = vst.msk [vmem:[%s1687_s10 - $0x4] sm:$0xf0] %vm1131_vm1, %v1129_v60 }
0x145f   :  { %v1125_v8 = vpop.xlane.xlu0 %1124 }
0x1460   :  { %v1126_v9 = vadd.f32 %v1125_v8, %v1002_v59 }
0x1462   :  { %1136 = vst.msk [vmem:[%s1686_s11] sm:$0x1] %vm1135_vm2, %v1126_v9 }

</bundles_post_ra>
